<compile_context>
chip_gen: v7x
topology: tpu7x:2x2x1
jax: 0.10.0
libtpu: 0.0.40
codegen_flags: <defaults>
</compile_context>

<pallas_src>
import functools

import jax
import jax.numpy as jnp
from jax import lax
from jax.experimental import pallas as pl
from jax.experimental.pallas import tpu as pltpu


def _fasttext_kernel(ids_ref, weff_ref, probs_ref, *, num_labels: int):
    """One batch block: token-id counts -> fused matmul -> masked softmax."""
    Bblk, S = ids_ref.shape            # static block shape, e.g. (8, 16)
    V, Lp = weff_ref.shape             # e.g. (128, 256), Lp lane-dense

    ids = ids_ref[...]                                        # (Bblk, S) int32

    # --- 1+2: bag-of-tokens counts, built as S 2-D compares (no (B,S,V)) ----
    lane_v = lax.broadcasted_iota(jnp.int32, (Bblk, V), 1)    # (Bblk, V)
    counts = jnp.zeros((Bblk, V), jnp.float32)
    for s in range(S):                                        # static unroll
        counts = counts + (ids[:, s:s + 1] == lane_v).astype(jnp.float32)
    # counts are exact small integers (<= S) -> lossless bf16 cast; the 1/S
    # mean-pool scale is already folded into W_eff by the wrapper.

    # --- 3: fused (gather+pool+classify) matmul on the MXU, bf16 x bf16 -----
    logits = jnp.dot(counts.astype(jnp.bfloat16), weff_ref[...],
                     preferred_element_type=jnp.float32)      # (Bblk, Lp) f32

    lane_l = lax.broadcasted_iota(jnp.int32, (Bblk, Lp), 1)
    logits = jnp.where(lane_l < num_labels, logits, jnp.float32(-1e30))

    # --- 4: softmax (f32, exact normalization); padded lanes -> exp(..)=0 ---
    m = jnp.max(logits, axis=-1, keepdims=True)               # (Bblk, 1)
    e = jnp.exp(logits - m)
    denom = jnp.sum(e, axis=-1, keepdims=True)
    probs_ref[...] = e / denom


def fasttext_detect(token_ids, emb_table, classifier_w):
    """FastText classifier forward; returns (probs (B, L) f32, pred label idx (B,) i32)."""
    B, S = token_ids.shape
    V, D = emb_table.shape
    _, L = classifier_w.shape

    Lp = ((L + 127) // 128) * 128                             # 176 -> 256
    BLOCK_B = 8
    Bp = ((B + BLOCK_B - 1) // BLOCK_B) * BLOCK_B             # sublane-dense batch

    # Fuse embedding pool + classifier: W_eff = (E @ W) / S, zero-padded to Lp.
    # (Only valid while V * Lp stays small; see production TODO above.)
    w_eff = (emb_table.astype(jnp.float32) @ classifier_w.astype(jnp.float32))
    w_eff = w_eff * (1.0 / float(S))                          # fold mean scale
    w_eff_p = (jnp.zeros((V, Lp), jnp.float32)
               .at[:, :L].set(w_eff)
               .astype(jnp.bfloat16))

    # Clamp ids (real tokenizers shouldn't go OOB) and pad the batch with 0s.
    ids_p = (jnp.zeros((Bp, S), jnp.int32)
             .at[:B, :].set(jnp.clip(token_ids, 0, V - 1).astype(jnp.int32)))

    probs_padded = pl.pallas_call(
        functools.partial(_fasttext_kernel, num_labels=L),
        out_shape=jax.ShapeDtypeStruct((Bp, Lp), jnp.float32),
        grid=(Bp // BLOCK_B,),
        in_specs=[
            pl.BlockSpec((BLOCK_B, S), lambda i: (i, 0)),     # token ids block
            pl.BlockSpec((V, Lp), lambda i: (0, 0)),          # fused classifier
        ],
        out_specs=pl.BlockSpec((BLOCK_B, Lp), lambda i: (i, 0)),
        compiler_params=pltpu.CompilerParams(
            dimension_semantics=("parallel",)),               # megacore on v7x
    )(ids_p, w_eff_p)

    probs = probs_padded[:B, :L]
    pred = jnp.argmax(probs, axis=-1).astype(jnp.int32)       # label-id argmax
    return probs, pred


def _reference(token_ids, emb_table, classifier_w):
    pooled = jnp.mean(emb_table[token_ids], axis=1)           # (B, D)
    logits = pooled @ classifier_w                            # (B, L)
    probs = jax.nn.softmax(logits, axis=-1)
    return probs, jnp.argmax(logits, axis=-1).astype(jnp.int32)


if __name__ == "__main__":
    # Small shapes consistent with a FastText classifier (lid.176 -> 176 labels).
    B, S = 4, 16          # batch of "texts", tokens per text
    V, D = 128, 32        # vocab (word + n-gram hash buckets), embedding dim
    L = 176               # number of language labels

    key = jax.random.PRNGKey(0)
    k_emb, k_w, k_ids = jax.random.split(key, 3)

    emb_table = jax.random.normal(k_emb, (V, D), dtype=jnp.float32) * 0.1
    classifier_w = jax.random.normal(k_w, (D, L), dtype=jnp.float32) * 0.1
    token_ids = jax.random.randint(k_ids, (B, S), 0, V, dtype=jnp.int32)

    probs, pred = fasttext_detect(token_ids, emb_table, classifier_w)
    probs = jax.block_until_ready(probs)
    pred = jax.block_until_ready(pred)

    ref_probs, ref_pred = _reference(token_ids, emb_table, classifier_w)
    assert probs.shape == (B, L)
    assert pred.shape == (B,)
    assert jnp.allclose(probs, ref_probs, atol=1e-4, rtol=1e-3)
    assert jnp.all(pred == ref_pred)
    assert jnp.allclose(jnp.sum(probs, axis=-1), 1.0, atol=1e-4)

    print("KERNEL_OK")
</pallas_src>

<mosaic_0001>
module attributes {stable_mosaic.version = 11 : i64} {
  func.func @_fasttext_kernel(%arg0: i32, %arg1: memref<8x16xi32, #tpu.memory_space<vmem>>, %arg2: memref<128x256xbf16, #tpu.memory_space<vmem>>, %arg3: memref<8x256xf32, #tpu.memory_space<vmem>>) attributes {dimension_semantics = [#tpu.dimension_semantics<parallel>], iteration_bounds = array<i64: 1>, scalar_prefetch = 0 : i64, scratch_operands = 0 : i64, tpu.core_type = #tpu.core_type<tc>, window_params = [{transform_indices = @transform_0, window_bounds = array<i64: 8, 16>}, {pipeline_mode = #tpu.pipeline_mode<synchronous>, transform_indices = @transform_1, window_bounds = array<i64: 128, 256>}, {transform_indices = @transform_2, window_bounds = array<i64: 8, 256>}]} {
    %c0 = arith.constant 0 : index
    %c0_0 = arith.constant 0 : index
    %0 = vector.load %arg1[%c0, %c0_0] : memref<8x16xi32, #tpu.memory_space<vmem>>, vector<8x16xi32>
    %1 = tpu.iota {dimensions = array<i32: 1>} : vector<8x128xi32>
    %cst = arith.constant 0.000000e+00 : f32
    %2 = vector.broadcast %cst : f32 to vector<8x128xf32>
    %3 = vector.extract_strided_slice %0 {offsets = [0, 0], sizes = [8, 1], strides = [1, 1]} : vector<8x16xi32> to vector<8x1xi32>
    %4 = vector.broadcast %3 : vector<8x1xi32> to vector<8x128xi32>
    %5 = arith.cmpi eq, %4, %1 : vector<8x128xi32>
    %6 = arith.extui %5 : vector<8x128xi1> to vector<8x128xi32>
    %7 = arith.sitofp %6 : vector<8x128xi32> to vector<8x128xf32>
    %8 = arith.addf %2, %7 : vector<8x128xf32>
    %9 = vector.extract_strided_slice %0 {offsets = [0, 1], sizes = [8, 1], strides = [1, 1]} : vector<8x16xi32> to vector<8x1xi32>
    %10 = vector.broadcast %9 : vector<8x1xi32> to vector<8x128xi32>
    %11 = arith.cmpi eq, %10, %1 : vector<8x128xi32>
    %12 = arith.extui %11 : vector<8x128xi1> to vector<8x128xi32>
    %13 = arith.sitofp %12 : vector<8x128xi32> to vector<8x128xf32>
    %14 = arith.addf %8, %13 : vector<8x128xf32>
    %15 = vector.extract_strided_slice %0 {offsets = [0, 2], sizes = [8, 1], strides = [1, 1]} : vector<8x16xi32> to vector<8x1xi32>
    %16 = vector.broadcast %15 : vector<8x1xi32> to vector<8x128xi32>
    %17 = arith.cmpi eq, %16, %1 : vector<8x128xi32>
    %18 = arith.extui %17 : vector<8x128xi1> to vector<8x128xi32>
    %19 = arith.sitofp %18 : vector<8x128xi32> to vector<8x128xf32>
    %20 = arith.addf %14, %19 : vector<8x128xf32>
    %21 = vector.extract_strided_slice %0 {offsets = [0, 3], sizes = [8, 1], strides = [1, 1]} : vector<8x16xi32> to vector<8x1xi32>
    %22 = vector.broadcast %21 : vector<8x1xi32> to vector<8x128xi32>
    %23 = arith.cmpi eq, %22, %1 : vector<8x128xi32>
    %24 = arith.extui %23 : vector<8x128xi1> to vector<8x128xi32>
    %25 = arith.sitofp %24 : vector<8x128xi32> to vector<8x128xf32>
    %26 = arith.addf %20, %25 : vector<8x128xf32>
    %27 = vector.extract_strided_slice %0 {offsets = [0, 4], sizes = [8, 1], strides = [1, 1]} : vector<8x16xi32> to vector<8x1xi32>
    %28 = vector.broadcast %27 : vector<8x1xi32> to vector<8x128xi32>
    %29 = arith.cmpi eq, %28, %1 : vector<8x128xi32>
    %30 = arith.extui %29 : vector<8x128xi1> to vector<8x128xi32>
    %31 = arith.sitofp %30 : vector<8x128xi32> to vector<8x128xf32>
    %32 = arith.addf %26, %31 : vector<8x128xf32>
    %33 = vector.extract_strided_slice %0 {offsets = [0, 5], sizes = [8, 1], strides = [1, 1]} : vector<8x16xi32> to vector<8x1xi32>
    %34 = vector.broadcast %33 : vector<8x1xi32> to vector<8x128xi32>
    %35 = arith.cmpi eq, %34, %1 : vector<8x128xi32>
    %36 = arith.extui %35 : vector<8x128xi1> to vector<8x128xi32>
    %37 = arith.sitofp %36 : vector<8x128xi32> to vector<8x128xf32>
    %38 = arith.addf %32, %37 : vector<8x128xf32>
    %39 = vector.extract_strided_slice %0 {offsets = [0, 6], sizes = [8, 1], strides = [1, 1]} : vector<8x16xi32> to vector<8x1xi32>
    %40 = vector.broadcast %39 : vector<8x1xi32> to vector<8x128xi32>
    %41 = arith.cmpi eq, %40, %1 : vector<8x128xi32>
    %42 = arith.extui %41 : vector<8x128xi1> to vector<8x128xi32>
    %43 = arith.sitofp %42 : vector<8x128xi32> to vector<8x128xf32>
    %44 = arith.addf %38, %43 : vector<8x128xf32>
    %45 = vector.extract_strided_slice %0 {offsets = [0, 7], sizes = [8, 1], strides = [1, 1]} : vector<8x16xi32> to vector<8x1xi32>
    %46 = vector.broadcast %45 : vector<8x1xi32> to vector<8x128xi32>
    %47 = arith.cmpi eq, %46, %1 : vector<8x128xi32>
    %48 = arith.extui %47 : vector<8x128xi1> to vector<8x128xi32>
    %49 = arith.sitofp %48 : vector<8x128xi32> to vector<8x128xf32>
    %50 = arith.addf %44, %49 : vector<8x128xf32>
    %51 = vector.extract_strided_slice %0 {offsets = [0, 8], sizes = [8, 1], strides = [1, 1]} : vector<8x16xi32> to vector<8x1xi32>
    %52 = vector.broadcast %51 : vector<8x1xi32> to vector<8x128xi32>
    %53 = arith.cmpi eq, %52, %1 : vector<8x128xi32>
    %54 = arith.extui %53 : vector<8x128xi1> to vector<8x128xi32>
    %55 = arith.sitofp %54 : vector<8x128xi32> to vector<8x128xf32>
    %56 = arith.addf %50, %55 : vector<8x128xf32>
    %57 = vector.extract_strided_slice %0 {offsets = [0, 9], sizes = [8, 1], strides = [1, 1]} : vector<8x16xi32> to vector<8x1xi32>
    %58 = vector.broadcast %57 : vector<8x1xi32> to vector<8x128xi32>
    %59 = arith.cmpi eq, %58, %1 : vector<8x128xi32>
    %60 = arith.extui %59 : vector<8x128xi1> to vector<8x128xi32>
    %61 = arith.sitofp %60 : vector<8x128xi32> to vector<8x128xf32>
    %62 = arith.addf %56, %61 : vector<8x128xf32>
    %63 = vector.extract_strided_slice %0 {offsets = [0, 10], sizes = [8, 1], strides = [1, 1]} : vector<8x16xi32> to vector<8x1xi32>
    %64 = vector.broadcast %63 : vector<8x1xi32> to vector<8x128xi32>
    %65 = arith.cmpi eq, %64, %1 : vector<8x128xi32>
    %66 = arith.extui %65 : vector<8x128xi1> to vector<8x128xi32>
    %67 = arith.sitofp %66 : vector<8x128xi32> to vector<8x128xf32>
    %68 = arith.addf %62, %67 : vector<8x128xf32>
    %69 = vector.extract_strided_slice %0 {offsets = [0, 11], sizes = [8, 1], strides = [1, 1]} : vector<8x16xi32> to vector<8x1xi32>
    %70 = vector.broadcast %69 : vector<8x1xi32> to vector<8x128xi32>
    %71 = arith.cmpi eq, %70, %1 : vector<8x128xi32>
    %72 = arith.extui %71 : vector<8x128xi1> to vector<8x128xi32>
    %73 = arith.sitofp %72 : vector<8x128xi32> to vector<8x128xf32>
    %74 = arith.addf %68, %73 : vector<8x128xf32>
    %75 = vector.extract_strided_slice %0 {offsets = [0, 12], sizes = [8, 1], strides = [1, 1]} : vector<8x16xi32> to vector<8x1xi32>
    %76 = vector.broadcast %75 : vector<8x1xi32> to vector<8x128xi32>
    %77 = arith.cmpi eq, %76, %1 : vector<8x128xi32>
    %78 = arith.extui %77 : vector<8x128xi1> to vector<8x128xi32>
    %79 = arith.sitofp %78 : vector<8x128xi32> to vector<8x128xf32>
    %80 = arith.addf %74, %79 : vector<8x128xf32>
    %81 = vector.extract_strided_slice %0 {offsets = [0, 13], sizes = [8, 1], strides = [1, 1]} : vector<8x16xi32> to vector<8x1xi32>
    %82 = vector.broadcast %81 : vector<8x1xi32> to vector<8x128xi32>
    %83 = arith.cmpi eq, %82, %1 : vector<8x128xi32>
    %84 = arith.extui %83 : vector<8x128xi1> to vector<8x128xi32>
    %85 = arith.sitofp %84 : vector<8x128xi32> to vector<8x128xf32>
    %86 = arith.addf %80, %85 : vector<8x128xf32>
    %87 = vector.extract_strided_slice %0 {offsets = [0, 14], sizes = [8, 1], strides = [1, 1]} : vector<8x16xi32> to vector<8x1xi32>
    %88 = vector.broadcast %87 : vector<8x1xi32> to vector<8x128xi32>
    %89 = arith.cmpi eq, %88, %1 : vector<8x128xi32>
    %90 = arith.extui %89 : vector<8x128xi1> to vector<8x128xi32>
    %91 = arith.sitofp %90 : vector<8x128xi32> to vector<8x128xf32>
    %92 = arith.addf %86, %91 : vector<8x128xf32>
    %93 = vector.extract_strided_slice %0 {offsets = [0, 15], sizes = [8, 1], strides = [1, 1]} : vector<8x16xi32> to vector<8x1xi32>
    %94 = vector.broadcast %93 : vector<8x1xi32> to vector<8x128xi32>
    %95 = arith.cmpi eq, %94, %1 : vector<8x128xi32>
    %96 = arith.extui %95 : vector<8x128xi1> to vector<8x128xi32>
    %97 = arith.sitofp %96 : vector<8x128xi32> to vector<8x128xf32>
    %98 = arith.addf %92, %97 : vector<8x128xf32>
    %99 = arith.truncf %98 : vector<8x128xf32> to vector<8x128xbf16>
    %c0_1 = arith.constant 0 : index
    %c0_2 = arith.constant 0 : index
    %100 = vector.load %arg2[%c0_1, %c0_2] : memref<128x256xbf16, #tpu.memory_space<vmem>>, vector<128x256xbf16>
    %cst_3 = arith.constant dense<0.000000e+00> : vector<8x256xf32>
    %101 = tpu.matmul %99, %100, %cst_3 {dimension_numbers = #tpu.dot_dimension_numbers<[1], [0], [0], [1], [0, 0, 1, 1], [], []>} : vector<8x128xbf16>, vector<128x256xbf16>, vector<8x256xf32> -> vector<8x256xf32>
    %102 = tpu.iota {dimensions = array<i32: 1>} : vector<8x256xi32>
    %c176_i32 = arith.constant 176 : i32
    %103 = vector.broadcast %c176_i32 : i32 to vector<8x256xi32>
    %104 = arith.cmpi slt, %102, %103 : vector<8x256xi32>
    %cst_4 = arith.constant -1.000000e+30 : f32
    %105 = vector.broadcast %cst_4 : f32 to vector<8x256xf32>
    %106 = arith.select %104, %101, %105 : vector<8x256xi1>, vector<8x256xf32>
    %cst_5 = arith.constant dense<0xFF800000> : vector<8xf32>
    %107 = vector.multi_reduction <maximumf>, %106, %cst_5 [1] : vector<8x256xf32> to vector<8xf32>
    %108 = vector.shape_cast %107 : vector<8xf32> to vector<8x1xf32>
    %109 = vector.broadcast %108 : vector<8x1xf32> to vector<8x256xf32>
    %110 = arith.subf %106, %109 : vector<8x256xf32>
    %111 = math.exp %110 : vector<8x256xf32>
    %cst_6 = arith.constant dense<0.000000e+00> : vector<8xf32>
    %112 = vector.multi_reduction <add>, %111, %cst_6 [1] : vector<8x256xf32> to vector<8xf32>
    %113 = vector.shape_cast %112 : vector<8xf32> to vector<8x1xf32>
    %114 = vector.broadcast %113 : vector<8x1xf32> to vector<8x256xf32>
    %115 = arith.divf %111, %114 : vector<8x256xf32>
    %c0_7 = arith.constant 0 : index
    %c0_8 = arith.constant 0 : index
    %116 = vector.load %arg3[%c0_7, %c0_8] : memref<8x256xf32, #tpu.memory_space<vmem>>, vector<8x256xf32>
    tpu.vector_store %arg3[%c0_7, %c0_8], %115 {strides = array<i32>} : memref<8x256xf32, #tpu.memory_space<vmem>>, vector<8x256xf32>,
    return
  }
  func.func @transform_0(%arg0: i32) -> (i32, i32) {
    %c0_i32 = arith.constant 0 : i32
    %c0_i32_0 = arith.constant 0 : i32
    return %arg0, %c0_i32 : i32, i32
  }
  func.func @transform_1(%arg0: i32) -> (i32, i32) {
    %c0_i32 = arith.constant 0 : i32
    %c0_i32_0 = arith.constant 0 : i32
    %c0_i32_1 = arith.constant 0 : i32
    return %c0_i32, %c0_i32_0 : i32, i32
  }
  func.func @transform_2(%arg0: i32) -> (i32, i32) {
    %c0_i32 = arith.constant 0 : i32
    %c0_i32_0 = arith.constant 0 : i32
    return %arg0, %c0_i32 : i32, i32
  }
}

</mosaic_0001>

<bundles_post_ra>
// kernel: tpu_custom_call.1
= control target key start
LH: loop header
LB: loop body
LE: loop exit
PB: predicated region body
PF: predicated region fallthrough
CT: control target
= control target key end

     0   :  { %7 = vsyncpa [#allocation3], 0  ;;  %s620_s0 = inlined_call_operand.hbm [shape: s32[8,16], index: 0, kind: input, shape index: {}]   ;;  %s621_s1 = inlined_call_operand.hbm [shape: bf16[128,256], index: 1, kind: input, shape index: {}]   ;;  %s622_s2 = inlined_call_operand.hbm [shape: f32[8,256], index: 2, kind: output, shape index: {}]  }
   0x1   :  { %8 = vsyncpa [#allocation6], 0 }
   0x2   :  { %9 = vsyncpa [#allocation4], 0  ;;  %s503_s9 = smov [#allocation2]   ;;  %s504_s11 = smov [#allocation5]  }
   0x3   :  { %s16_s10 = sshll.u32 %s503_s9, 4  ;;  %s25_s12 = sshll.u32 %s504_s11, 4  ;;  %s17_s10 = int_to_ptr.vmem [resolvable:$true] %s16_s10  ;;  %s540_s12 = int_to_ptr.vmem [resolvable:$true] %s25_s12 }
   0x4   :  { %s431_s15 = scalar_lea.hbm %s620_s0, 128 }
   0x5   :  { %p432_p0 = scmp.ne.s32.totalorder %s620_s0, %s431_s15  ;;  %p435_p1 = scmp.lt.u32.totalorder %s431_s15, %s620_s0 }
   0x7   :  { %p437_p2 = pnand %p435_p1, %p432_p0 }
   0x9   :  { %440 = shalt.err (!%p437_p2)
}
   0xa   :  { %s441_s20 = scalar_lea.vmem %s17_s10, 128  ;;  %p446_p4 = scmp.lt.s32.totalorder %s17_s10, %s17_s10 }
   0xb   :  { %p442_p3 = scmp.ne.s32.totalorder %s17_s10, %s441_s20  ;;  %p447_p5 = scmp.lt.s32.totalorder %s441_s20, %s441_s20 }
   0xd   :  { %p448_p6 = por %p447_p5, %p446_p4 }
   0xf   :  { %p449_p7 = pnand %p448_p6, %p442_p3 }
  0x11   :  { %452 = shalt.err (!%p449_p7)
}
  0x12   :  { %19 = dma.hbm_to_vmem [thread:$0]  %s620_s0, 128, %s17_s10, [#allocation3]  }
  0x13   :  { %s453_s25 = scalar_lea.hbm %s621_s1, 2048 }
  0x14   :  { %p454_p8 = scmp.ne.s32.totalorder %s621_s1, %s453_s25  ;;  %p457_p9 = scmp.lt.u32.totalorder %s453_s25, %s621_s1 }
  0x16   :  { %p459_p10 = pnand %p457_p9, %p454_p8 }
  0x18   :  { %462 = shalt.err (!%p459_p10)
}
  0x19   :  { %s463_s30 = scalar_lea.vmem %s540_s12, 2048  ;;  %p468_p12 = scmp.lt.s32.totalorder %s540_s12, %s540_s12 }
  0x1a   :  { %p464_p11 = scmp.ne.s32.totalorder %s540_s12, %s463_s30  ;;  %p469_p13 = scmp.lt.s32.totalorder %s463_s30, %s463_s30 }
  0x1c   :  { %p470_p0 = por %p469_p13, %p468_p12 }
  0x1e   :  { %p471_p1 = pnand %p470_p0, %p464_p11 }
  0x20   :  { %474 = shalt.err (!%p471_p1)
}
  0x21   :  { %s505_s0 = smov 128   ;;  %s506_s3 = smov 8  }
  0x22   :  { %31 = dma.hbm_to_vmem [thread:$0]  %s621_s1, 2048, %s540_s12, [#allocation6], %s505_s0, %s505_s0, %s506_s3  }
  0x23   :  { %497 = dma.done.wait [#allocation3], 128  }
  0x24   :  { %498 = vsyncadd [#allocation3], 4294967168 }
  0x25   :  { %499 = dma.done.wait [#allocation6], 2048  }
  0x26   :  { %500 = vsyncadd [#allocation6], 4294965248  ;;  %v507_v0 = vmov 2   ;;  %v508_v1 = vmov 0   ;;  %v571_v2 = vld [vmem:[#allocation2] sm:$0xff]  ;;  %v509_v3 = vmov 3   ;;  %v40_v33 = vlaneseq }
  0x27   :  { %386 = vset.pattern.permute.xlu1 %v507_v0  ;;  %384 = vset.pattern.permute.xlu0 %v508_v1  ;;  %v510_v4 = vmov 1   ;;  %v511_v5 = vmov 4   ;;  %v512_v6 = vmov 5   ;;  %v513_v7 = vmov 6   ;;  %v401_v9 = vld [vmem:[#allocation5 + $0x4] ss:$8 sps:$4 sm:$0xff]  }
  0x28   :  { %283 = vmatprep.mubr.bf16.mxu0 %v508_v1  ;;  %57 = vperm.xlu1 %386, %v571_v2   ;;  %v514_v8 = vmov 8   ;;  %v403_v10 = vld [vmem:[#allocation5] ss:$8 sps:$4 sm:$0xff]   ;;  %v515_v11 = vmov 7   ;;  %v516_v12 = vmov 11   ;;  %v517_v15 = vmov 9  }
  0x29   :  { %43 = vperm.xlu0 %384, %v571_v2   ;;  %251 = vmatprep.subr.bf16.mxu0 %v401_v9  ;;  %v404_v13 = vld [vmem:[#allocation5 + $0x14] ss:$8 sps:$4 sm:$0xff]   ;;  %v406_v14 = vld [vmem:[#allocation5 + $0x10] ss:$8 sps:$4 sm:$0xff]   ;;  %v518_v16 = vmov 14   ;;  %v519_v19 = vmov 10  }
  0x2a   :  { %252 = vmatpush1.bf16.msra.mxu0 %v403_v10  ;;  %v407_v17 = vld [vmem:[#allocation5 + $0x24] ss:$8 sps:$4 sm:$0xff]   ;;  %v409_v18 = vld [vmem:[#allocation5 + $0x20] ss:$8 sps:$4 sm:$0xff]   ;;  %v410_v20 = vld [vmem:[#allocation5 + $0x34] ss:$8 sps:$4 sm:$0xff]  }
  0x2b   :  { %253 = vmatprep.subr.bf16.mxu0 %v404_v13  ;;  %v520_v21 = vmov 15   ;;  %v412_v22 = vld [vmem:[#allocation5 + $0x30] ss:$8 sps:$4 sm:$0xff]   ;;  %v413_v23 = vld [vmem:[#allocation5 + $0x44] ss:$8 sps:$4 sm:$0xff]   ;;  %v521_v24 = vmov 12  }
  0x2c   :  { %387 = vset.pattern.permute.xlu1 %v509_v3  ;;  %v415_v25 = vld [vmem:[#allocation5 + $0x40] ss:$8 sps:$4 sm:$0xff]   ;;  %v416_v26 = vld [vmem:[#allocation5 + $0x54] ss:$8 sps:$4 sm:$0xff]   ;;  %v418_v27 = vld [vmem:[#allocation5 + $0x50] ss:$8 sps:$4 sm:$0xff]  }
  0x2d   :  { %385 = vset.pattern.permute.xlu0 %v510_v4  ;;  %64 = vperm.xlu1 %387, %v571_v2   ;;  %v522_v28 = vmov 13   ;;  %v419_v29 = vld [vmem:[#allocation5 + $0x64] ss:$8 sps:$4 sm:$0xff]   ;;  %v421_v30 = vld [vmem:[#allocation5 + $0x60] ss:$8 sps:$4 sm:$0xff]   ;;  %v589_v34 = vand.u32 127, %v40_v33 }
  0x2e   :  { %50 = vperm.xlu0 %385, %v571_v2   ;;  %254 = vmatpush1.bf16.msra.mxu0 %v406_v14  ;;  %v422_v31 = vld [vmem:[#allocation5 + $0x74] ss:$8 sps:$4 sm:$0xff]   ;;  %v424_v32 = vld [vmem:[#allocation5 + $0x70] ss:$8 sps:$4 sm:$0xff]   ;;  %v523_v37 = vmov 0.0   ;;  %s524_s1 = smov [#allocation7]  }
  0x2f   :  { %255 = vmatprep.subr.bf16.mxu0 %v407_v17  ;;  %s320_s6 = sshll.u32 %s524_s1, 4  ;;  %s321_s6 = int_to_ptr.vmem [resolvable:$true] %s320_s6 }
  0x30   :  { %s475_s7 = scalar_lea.vmem %s321_s6, 256  ;;  %p480_p3 = scmp.lt.s32.totalorder %s321_s6, %s321_s6 }
  0x31   :  { %388 = vset.pattern.permute.xlu1 %v511_v5  ;;  %p476_p2 = scmp.ne.s32.totalorder %s321_s6, %s475_s7  ;;  %p481_p4 = scmp.lt.s32.totalorder %s475_s7, %s475_s7 }
  0x32   :  { %389 = vset.pattern.permute.xlu0 %v512_v6  ;;  %71 = vperm.xlu1 %388, %v571_v2  }
  0x33   :  { %78 = vperm.xlu0 %389, %v571_v2   ;;  %256 = vmatpush1.bf16.msra.mxu0 %v409_v18  ;;  %p482_p5 = por %p481_p4, %p480_p3 }
  0x34   :  { %257 = vmatprep.subr.bf16.mxu0 %v410_v20  ;;  %v292_v20 = vadd.s32 128, %v589_v34 }
  0x35   :  { %p483_p6 = pnand %p482_p5, %p476_p2 }
  0x36   :  { %390 = vset.pattern.permute.xlu1 %v513_v7 }
  0x37   :  { %392 = vset.pattern.permute.xlu0 %v514_v8  ;;  %85 = vperm.xlu1 %390, %v571_v2  }
  0x38   :  { %99 = vperm.xlu0 %392, %v571_v2   ;;  %258 = vmatpush1.bf16.msra.mxu0 %v412_v22 }
  0x39   :  { %259 = vmatprep.subr.bf16.mxu0 %v413_v23 }
  0x3b   :  { %391 = vset.pattern.permute.xlu1 %v515_v11 }
  0x3c   :  { %395 = vset.pattern.permute.xlu0 %v516_v12  ;;  %92 = vperm.xlu1 %391, %v571_v2  }
  0x3d   :  { %120 = vperm.xlu0 %395, %v571_v2   ;;  %260 = vmatpush1.bf16.msra.mxu0 %v415_v25 }
  0x3e   :  { %261 = vmatprep.subr.bf16.mxu0 %v416_v26 }
  0x40   :  { %393 = vset.pattern.permute.xlu1 %v517_v15 }
  0x41   :  { %398 = vset.pattern.permute.xlu0 %v518_v16  ;;  %106 = vperm.xlu1 %393, %v571_v2  }
  0x42   :  { %141 = vperm.xlu0 %398, %v571_v2   ;;  %262 = vmatpush1.bf16.msra.mxu0 %v418_v27 }
  0x43   :  { %263 = vmatprep.subr.bf16.mxu0 %v419_v29 }
  0x45   :  { %394 = vset.pattern.permute.xlu1 %v519_v19 }
  0x46   :  { %400 = vset.pattern.permute.xlu0 %v520_v21  ;;  %113 = vperm.xlu1 %394, %v571_v2  }
  0x47   :  { %264 = vmatpush1.bf16.msra.mxu0 %v421_v30 }
  0x48   :  { %265 = vmatprep.subr.bf16.mxu0 %v422_v31 }
  0x4a   :  { %396 = vset.pattern.permute.xlu1 %v521_v24 }
  0x4b   :  { %127 = vperm.xlu1 %396, %v571_v2   ;;  %266 = vmatpush1.bf16.msra.mxu0 %v424_v32 }
  0x4f   :  { %397 = vset.pattern.permute.xlu1 %v522_v28 }
  0x50   :  { %134 = vperm.xlu1 %397, %v571_v2  }
  0x54   :  { %399 = vset.pattern.permute.xlu1 %v520_v21 }
  0x55   :  { %148 = vperm.xlu1 %399, %v571_v2  }
  0xa7   :  { %v58_v35 = vpop.permute.xlu1 %57 }
  0xa8   :  { %v44_v36 = vpop.permute.xlu0 %43  ;;  %vm59_vm1 = vcmp.eq.s32.totalorder %v58_v35, %v589_v34 }
  0xa9   :  { %vm45_vm0 = vcmp.eq.s32.totalorder %v44_v36, %v589_v34  ;;  %v332_v43 = vsel %vm59_vm1, 1.0, %v523_v37 }
  0xaa   :  { %v330_v38 = vsel %vm45_vm0, 1.0, %v523_v37  ;;  %vm294_vm0 = vcmp.lt.s32.totalorder %v292_v20, 176 }
  0xac   :  { %v65_v39 = vpop.permute.xlu1 %64 }
  0xad   :  { %v51_v40 = vpop.permute.xlu0 %50  ;;  %vm66_vm3 = vcmp.eq.s32.totalorder %v65_v39, %v589_v34 }
  0xae   :  { %vm52_vm2 = vcmp.eq.s32.totalorder %v51_v40, %v589_v34  ;;  %v333_v47 = vsel %vm66_vm3, 1.0, %v523_v37 }
  0xaf   :  { %v331_v41 = vsel %vm52_vm2, 1.0, %v523_v37 }
  0xb0   :  { %v55_v42 = vadd.f32 %v331_v41, %v330_v38 }
  0xb1   :  { %v72_v45 = vpop.permute.xlu1 %71 }
  0xb2   :  { %v62_v44 = vadd.f32 %v332_v43, %v55_v42  ;;  %v79_v46 = vpop.permute.xlu0 %78  ;;  %vm73_vm4 = vcmp.eq.s32.totalorder %v72_v45, %v589_v34 }
  0xb3   :  { %vm80_vm5 = vcmp.eq.s32.totalorder %v79_v46, %v589_v34  ;;  %v334_v49 = vsel %vm73_vm4, 1.0, %v523_v37 }
  0xb4   :  { %v69_v48 = vadd.f32 %v333_v47, %v62_v44  ;;  %v335_v51 = vsel %vm80_vm5, 1.0, %v523_v37 }
  0xb6   :  { %v76_v50 = vadd.f32 %v334_v49, %v69_v48  ;;  %v86_v52 = vpop.permute.xlu1 %85 }
  0xb7   :  { %vm87_vm6 = vcmp.eq.s32.totalorder %v86_v52, %v589_v34  ;;  %v100_v55 = vpop.permute.xlu0 %99 }
  0xb8   :  { %v83_v53 = vadd.f32 %v335_v51, %v76_v50  ;;  %v336_v54 = vsel %vm87_vm6, 1.0, %v523_v37  ;;  %vm101_vm8 = vcmp.eq.s32.totalorder %v100_v55, %v589_v34 }
  0xb9   :  { %v338_v60 = vsel %vm101_vm8, 1.0, %v523_v37 }
  0xba   :  { %v90_v57 = vadd.f32 %v336_v54, %v83_v53 }
  0xbb   :  { %v93_v56 = vpop.permute.xlu1 %92 }
  0xbc   :  { %vm94_vm7 = vcmp.eq.s32.totalorder %v93_v56, %v589_v34  ;;  %v121_v0 = vpop.permute.xlu0 %120 }
  0xbd   :  { %v337_v58 = vsel %vm94_vm7, 1.0, %v523_v37  ;;  %vm122_vm11 = vcmp.eq.s32.totalorder %v121_v0, %v589_v34 }
  0xbe   :  { %v97_v59 = vadd.f32 %v337_v58, %v90_v57  ;;  %v341_v5 = vsel %vm122_vm11, 1.0, %v523_v37 }
  0xc0   :  { %v107_v61 = vpop.permute.xlu1 %106  ;;  %v104_v62 = vadd.f32 %v338_v60, %v97_v59 }
  0xc1   :  { %vm108_vm9 = vcmp.eq.s32.totalorder %v107_v61, %v589_v34  ;;  %v142_v7 = vpop.permute.xlu0 %141 }
  0xc2   :  { %v339_v63 = vsel %vm108_vm9, 1.0, %v523_v37  ;;  %vm143_vm13 = vcmp.eq.s32.totalorder %v142_v7, %v589_v34 }
  0xc3   :  { %v111_v2 = vadd.f32 %v339_v63, %v104_v62  ;;  %v344_v13 = vsel %vm143_vm13, 1.0, %v523_v37 }
  0xc5   :  { %v114_v1 = vpop.permute.xlu1 %113 }
  0xc6   :  { %vm115_vm10 = vcmp.eq.s32.totalorder %v114_v1, %v589_v34 }
  0xc7   :  { %v340_v3 = vsel %vm115_vm10, 1.0, %v523_v37 }
  0xc8   :  { %v118_v4 = vadd.f32 %v340_v3, %v111_v2 }
  0xca   :  { %v128_v6 = vpop.permute.xlu1 %127  ;;  %v125_v8 = vadd.f32 %v341_v5, %v118_v4 }
  0xcb   :  { %vm129_vm12 = vcmp.eq.s32.totalorder %v128_v6, %v589_v34 }
  0xcc   :  { %v342_v9 = vsel %vm129_vm12, 1.0, %v523_v37 }
  0xcd   :  { %v132_v11 = vadd.f32 %v342_v9, %v125_v8 }
  0xcf   :  { %v135_v10 = vpop.permute.xlu1 %134 }
  0xd0   :  { %vm136_vm14 = vcmp.eq.s32.totalorder %v135_v10, %v589_v34 }
  0xd1   :  { %v343_v12 = vsel %vm136_vm14, 1.0, %v523_v37 }
  0xd2   :  { %v139_v14 = vadd.f32 %v343_v12, %v132_v11 }
  0xd4   :  { %v146_v15 = vadd.f32 %v344_v13, %v139_v14  ;;  %v149_v16 = vpop.permute.xlu1 %148 }
  0xd5   :  { %vm150_vm15 = vcmp.eq.s32.totalorder %v149_v16, %v589_v34 }
  0xd6   :  { %v345_v17 = vsel %vm150_vm15, 1.0, %v523_v37 }
  0xd7   :  { %v153_v18 = vadd.f32 %v345_v17, %v146_v15 }
  0xd9   :  { %v154_v19 = vpack.c.bf16 %v153_v18, %v153_v18 }
  0xdb   :  { %284 = vmatmul.mubr.bf16.vlgmr.msra.gmra.mrb[0].mxu0 %v154_v19 }
 0x1ae   :  { %v285_v21 = vpop.f32.mrb[0].mxu0 }
 0x1af   :  { %v287_v22 = vpop.f32.mrb[1].mxu0 }
 0x1b0   :  { %v296_v23 = vsel %vm294_vm0, %v287_v22, -1e+30  ;;  %v289_v24 = vpop.f32.mrb[2].mxu0 }
 0x1b1   :  { %v290_v25 = vpop.f32.mrb[3].mxu0  ;;  %v297_v26 = vmax.f32 %v285_v21, %v296_v23 }
 0x1b3   :  { %298 = vmax.xlane.f32.xlu1 %v297_v26 }
 0x240   :  { %v299_v27 = vpop.xlane.xlu1 %298 }
 0x241   :  { %v300_v28 = vsub.f32 %v285_v21, %v299_v27  ;;  %v301_v29 = vsub.f32 %v296_v23, %v299_v27 }
 0x243   :  { %v302_v30 = vmul.f32 1.442695, %v300_v28  ;;  %v304_v31 = vmul.f32 1.442695, %v301_v29 }
 0x245   :  { %425 = vpow2.f32 %v302_v30 }
 0x246   :  { %427 = vpow2.f32 %v304_v31 }
 0x24f   :  { %v426_v32 = vpop.eup %425 }
 0x250   :  { %v428_v33 = vpop.eup %427 }
 0x251   :  { %v306_v35 = vadd.f32 %v428_v33, %v426_v32 }
 0x253   :  { %307 = vadd.xlane.f32.xlu0 %v306_v35 }
 0x2e0   :  { %v308_v34 = vpop.xlane.xlu0 %307 }
 0x2e1   :  { %429 = vrcp.f32 %v308_v34 }
 0x2eb   :  { %v430_v36 = vpop.eup %429 }
 0x2ec   :  { %v310_v37 = vmul.f32 %v430_v36, %v426_v32  ;;  %v311_v38 = vmul.f32 %v430_v36, %v428_v33 }
 0x2ee   :  { %312 = vst [vmem:[#allocation7] sm:$0xff] %v310_v37  ;;  %313 = vst [vmem:[#allocation7 + $0x8] sm:$0xff] %v311_v38 }
 0x2ef   :  { %486 = shalt.err (!%p483_p6)
}
 0x2f0   :  { %s487_s10 = scalar_lea.hbm %s622_s2, 256 }
 0x2f1   :  { %p488_p7 = scmp.ne.s32.totalorder %s622_s2, %s487_s10  ;;  %p491_p8 = scmp.lt.u32.totalorder %s487_s10, %s622_s2 }
 0x2f3   :  { %p493_p9 = pnand %p491_p8, %p488_p7 }
 0x2f5   :  { %496 = shalt.err (!%p493_p9)
}
 0x2f6   :  { %323 = dma.vmem_to_hbm [thread:$0]  %s321_s6, 256, %s622_s2, [#allocation4]  }
 0x2f7   :  { %501 = dma.done.wait [#allocation4], 256  }
 0x2f8   :  { %502 = vsyncadd [#allocation4], 4294967040 }
 0x2f9   :  { %327 = vsyncpa [#allocation3], 1 }
 0x2fa   :  { %328 = vsyncpa [#allocation6], 1 }
 0x2fb   :  { %329 = vsyncpa [#allocation4], 1 }

</bundles_post_ra>
